<compile_context>
chip_gen: v7x
topology: tpu7x:2x2x1
jax: 0.10.0
libtpu: 0.0.40
codegen_flags: <defaults>
</compile_context>

<pallas_src>
import functools
import math

import jax
import jax.numpy as jnp
from jax.experimental import pallas as pl
from jax.experimental.pallas import tpu as pltpu

LANES = 128
SUBLANES = 8
ALIGN = SUBLANES * LANES            # 1024 elements per (8, 128) f32 tile
DESIRED_ROW_TILE = 4096             # 4096 x 128 f32 = 2 MiB per input per step
VMEM_LIMIT_BYTES = 64 * 1024 * 1024


@functools.lru_cache(maxsize=1)
def _core_split():
    """Return (number of cores to split the leading grid axis over, axis semantics)."""
    try:
        kind = jax.devices()[0].device_kind.lower()
    except Exception:
        kind = ""
    if "v7" in kind:
        # 2 TensorCores per chip; only CORE_PARALLEL reliably shards a grid axis.
        return 2, getattr(pltpu, "CORE_PARALLEL", "parallel")
    if ("v4" in kind) or ("v5p" in kind):
        # Megacore: plain "parallel" splits grid axes across the two cores.
        return 2, "parallel"
    return 1, "arbitrary"


def _masked_dist_kernel(p_ref, t_ref, m_ref, o_ref, acc_sum, acc_cnt, *,
                        distance_type, rows, row_tile, steps_per_core):
    c = pl.program_id(0)            # core / stream-half index
    i = pl.program_id(1)            # step within this half

    @pl.when(i == 0)
    def _init():
        acc_sum[...] = jnp.zeros_like(acc_sum)
        acc_cnt[...] = jnp.zeros_like(acc_cnt)

    p = p_ref[...].astype(jnp.float32)
    t = t_ref[...].astype(jnp.float32)
    m = m_ref[...].astype(jnp.float32)

    d = (p - t) * m                 # == p*m - t*m, one fewer multiply
    if distance_type == "L2":
        val = d * d
    elif distance_type == "L1":
        val = jnp.abs(d)
    else:
        raise ValueError(f"unsupported distance_type {distance_type}")
    cnt = (m > 0).astype(jnp.float32)

    # UNCLAMPED logical block index (the index_map clamps the DMA; validity must not).
    blk = c * steps_per_core + i
    block_is_full = (blk + 1) * row_tile <= rows

    def _accumulate(v, k):
        # Tree-reduce the (row_tile, 128) tile into the fixed (8, 128) accumulators.
        acc_sum[...] += jnp.sum(v.reshape(-1, SUBLANES, LANES), axis=0)
        acc_cnt[...] += jnp.sum(k.reshape(-1, SUBLANES, LANES), axis=0)

    @pl.when(block_is_full)
    def _fast():                    # interior blocks: no masking work at all
        _accumulate(val, cnt)

    @pl.when(jnp.logical_not(block_is_full))
    def _slow():                    # at most one partial / overflow block per core
        row_ids = blk * row_tile + jax.lax.broadcasted_iota(
            jnp.int32, (row_tile, LANES), 0)
        valid = row_ids < rows
        zero = jnp.float32(0.0)
        _accumulate(jnp.where(valid, val, zero), jnp.where(valid, cnt, zero))

    @pl.when(i == pl.num_programs(1) - 1)
    def _finalize():
        # Single cross-lane/sublane reduction per core, epilogue only.
        o_ref[0, 0] = jnp.sum(acc_sum[...])
        o_ref[0, 1] = jnp.sum(acc_cnt[...])


def _run_kernel(p2, t2, m2, distance_type):
    rows = p2.shape[0]                              # multiple of SUBLANES
    num_cores, core_sem = _core_split()
    row_tile = min(DESIRED_ROW_TILE, rows)          # multiple of 8, <= rows
    num_row_blocks = -(-rows // row_tile)
    num_cores = max(1, min(num_cores, num_row_blocks))
    if num_cores == 1:
        core_sem = "arbitrary"
    steps_per_core = -(-num_row_blocks // num_cores)
    last_block = num_row_blocks - 1

    kernel = functools.partial(
        _masked_dist_kernel,
        distance_type=distance_type,
        rows=rows,
        row_tile=row_tile,
        steps_per_core=steps_per_core,
    )

    def in_map(c, i):
        # Clamp so the DMA never walks past the array; overflow blocks are fully
        # neutralized in-kernel via the UNCLAMPED-index row-validity test.
        return (jnp.minimum(c * steps_per_core + i, last_block), 0)

    out = pl.pallas_call(
        kernel,
        out_shape=jax.ShapeDtypeStruct((num_cores, 2), jnp.float32),
        grid_spec=pltpu.PrefetchScalarGridSpec(
            num_scalar_prefetch=0,
            grid=(num_cores, steps_per_core),
            in_specs=[
                pl.BlockSpec((row_tile, LANES), in_map),
                pl.BlockSpec((row_tile, LANES), in_map),
                pl.BlockSpec((row_tile, LANES), in_map),
            ],
            out_specs=pl.BlockSpec(
                (1, 2), lambda c, i: (c, 0), memory_space=pltpu.SMEM),
            scratch_shapes=[
                pltpu.VMEM((SUBLANES, LANES), jnp.float32),   # sum accumulator
                pltpu.VMEM((SUBLANES, LANES), jnp.float32),   # count accumulator
            ],
        ),
        compiler_params=pltpu.CompilerParams(
            dimension_semantics=(core_sem, "arbitrary"),
            vmem_limit_bytes=VMEM_LIMIT_BYTES,
        ),
    )(p2, t2, m2)

    return jnp.sum(out[:, 0]), jnp.sum(out[:, 1])


@functools.partial(jax.jit, static_argnames=("distance_type",))
def masked_dist(preds, targets, mask, distance_type="L2"):
    if distance_type not in ("L2", "L1"):
        raise ValueError(f"unsupported distance_type {distance_type!r}")
    assert preds.shape == targets.shape

    if mask.shape != preds.shape:
        # TODO(synk): for genuinely-broadcast masks, feed the small mask with size-1
        # block dims instead of materializing a preds-sized copy in HBM.
        mask = jnp.broadcast_to(mask, preds.shape)

    def _prep_dtype(x):
        # TODO(synk): sub-32-bit inputs (bf16/int8/bool) need 16/32-row sublane
        # packing; cast them up here rather than special-casing the block layout.
        return x if x.dtype.itemsize == 4 else x.astype(jnp.float32)

    preds, targets, mask = (_prep_dtype(x) for x in (preds, targets, mask))

    n = math.prod(preds.shape)
    if n == 0:
        return jnp.float32(0.0)     # reference: 0 / (0 + 1)

    n_aligned = (n // ALIGN) * ALIGN
    p_flat = preds.reshape(-1)      # free for contiguous inputs
    t_flat = targets.reshape(-1)
    m_flat = mask.reshape(-1)

    total = jnp.float32(0.0)
    count = jnp.float32(0.0)

    if n_aligned:
        s, c = _run_kernel(
            p_flat[:n_aligned].reshape(-1, LANES),
            t_flat[:n_aligned].reshape(-1, LANES),
            m_flat[:n_aligned].reshape(-1, LANES),
            distance_type,
        )
        total += s
        count += c

    if n_aligned < n:
        # <1024-element tail reduced with plain jnp (no full-array pad copy).
        tp = p_flat[n_aligned:].astype(jnp.float32)
        tt = t_flat[n_aligned:].astype(jnp.float32)
        tm = m_flat[n_aligned:].astype(jnp.float32)
        d = (tp - tt) * tm
        if distance_type == "L2":
            total += jnp.sum(d * d)
        else:
            total += jnp.sum(jnp.abs(d))
        count += jnp.sum((tm > 0).astype(jnp.float32))

    return total / (count + jnp.float32(1.0))


def _reference(preds, targets, mask, distance_type="L2"):
    mask = jnp.broadcast_to(mask, preds.shape).astype(jnp.float32)
    pm = preds.astype(jnp.float32) * mask
    tm = targets.astype(jnp.float32) * mask
    if distance_type == "L2":
        s = jnp.sum((pm - tm) ** 2)
    else:
        s = jnp.sum(jnp.abs(pm - tm))
    return s / (jnp.sum(mask > 0) + 1)


if __name__ == "__main__":
    key = jax.random.PRNGKey(0)

    ok = True
    # (2,4,16,16): NCHW-like, element count multiple of 1024 (aligned fast path).
    # (3,5,7,11): odd element count, exercises the jnp tail path.
    # (8,8,96,96): multi-step grid with a partial last block (slow-path coverage).
    for shape in ((2, 4, 16, 16), (3, 5, 7, 11), (8, 8, 96, 96)):
        kp, kt, km, key = jax.random.split(key, 4)
        preds = jax.random.normal(kp, shape, dtype=jnp.float32)
        targets = jax.random.normal(kt, shape, dtype=jnp.float32)
        mask = (jax.random.uniform(km, shape) > 0.5).astype(jnp.float32)

        for dist in ("L2", "L1"):
            out = masked_dist(preds, targets, mask, distance_type=dist)
            out = jax.block_until_ready(out)
            ref = _reference(preds, targets, mask, distance_type=dist)
            if not jnp.allclose(out, ref, rtol=1e-4, atol=1e-6):
                ok = False
                print(f"MISMATCH {dist} {shape}: kernel={out} ref={ref}")

    if ok:
        print("KERNEL_OK")
</pallas_src>

<mosaic_0001>
module attributes {stable_mosaic.version = 11 : i64} {
  func.func @_masked_dist_kernel(%arg0: i32, %arg1: i32, %arg2: memref<16x128xf32, #tpu.memory_space<vmem>>, %arg3: memref<16x128xf32, #tpu.memory_space<vmem>>, %arg4: memref<16x128xf32, #tpu.memory_space<vmem>>, %arg5: memref<1x2xf32, #tpu.memory_space<smem>>, %arg6: memref<8x128xf32, #tpu.memory_space<vmem>>, %arg7: memref<8x128xf32, #tpu.memory_space<vmem>>) attributes {dimension_semantics = [#tpu.dimension_semantics<arbitrary>, #tpu.dimension_semantics<arbitrary>], iteration_bounds = array<i64: 1, 1>, scalar_prefetch = 0 : i64, scratch_operands = 2 : i64, tpu.core_type = #tpu.core_type<tc>, window_params = [{transform_indices = @transform_0, window_bounds = array<i64: 16, 128>}, {transform_indices = @transform_1, window_bounds = array<i64: 16, 128>}, {transform_indices = @transform_2, window_bounds = array<i64: 16, 128>}, {transform_indices = @transform_3, window_bounds = array<i64: 1, 2>}]} {
    %c0_i32 = arith.constant 0 : i32
    %0 = arith.cmpi eq, %arg1, %c0_i32 : i32
    %1 = arith.extui %0 : i1 to i32
    %c0_i32_0 = arith.constant 0 : i32
    %2 = arith.cmpi ne, %1, %c0_i32_0 : i32
    scf.if %2 {
      %cst_12 = arith.constant 0.000000e+00 : f32
      %26 = vector.broadcast %cst_12 : f32 to vector<8x128xf32>
      %c0_13 = arith.constant 0 : index
      %c0_14 = arith.constant 0 : index
      %27 = vector.load %arg6[%c0_13, %c0_14] : memref<8x128xf32, #tpu.memory_space<vmem>>, vector<8x128xf32>
      tpu.vector_store %arg6[%c0_13, %c0_14], %26 {strides = array<i32>} : memref<8x128xf32, #tpu.memory_space<vmem>>, vector<8x128xf32>,
      %cst_15 = arith.constant 0.000000e+00 : f32
      %28 = vector.broadcast %cst_15 : f32 to vector<8x128xf32>
      %c0_16 = arith.constant 0 : index
      %c0_17 = arith.constant 0 : index
      %29 = vector.load %arg7[%c0_16, %c0_17] : memref<8x128xf32, #tpu.memory_space<vmem>>, vector<8x128xf32>
      tpu.vector_store %arg7[%c0_16, %c0_17], %28 {strides = array<i32>} : memref<8x128xf32, #tpu.memory_space<vmem>>, vector<8x128xf32>,
    } else {
    }
    %c0 = arith.constant 0 : index
    %c0_1 = arith.constant 0 : index
    %3 = vector.load %arg2[%c0, %c0_1] : memref<16x128xf32, #tpu.memory_space<vmem>>, vector<16x128xf32>
    %c0_2 = arith.constant 0 : index
    %c0_3 = arith.constant 0 : index
    %4 = vector.load %arg3[%c0_2, %c0_3] : memref<16x128xf32, #tpu.memory_space<vmem>>, vector<16x128xf32>
    %c0_4 = arith.constant 0 : index
    %c0_5 = arith.constant 0 : index
    %5 = vector.load %arg4[%c0_4, %c0_5] : memref<16x128xf32, #tpu.memory_space<vmem>>, vector<16x128xf32>
    %6 = arith.subf %3, %4 : vector<16x128xf32>
    %7 = arith.mulf %6, %5 : vector<16x128xf32>
    %8 = arith.mulf %7, %7 : vector<16x128xf32>
    %cst = arith.constant 0.000000e+00 : f32
    %9 = vector.broadcast %cst : f32 to vector<16x128xf32>
    %10 = arith.cmpf ogt, %5, %9 : vector<16x128xf32>
    %11 = arith.extui %10 : vector<16x128xi1> to vector<16x128xi32>
    %12 = arith.sitofp %11 : vector<16x128xi32> to vector<16x128xf32>
    %c1_i32 = arith.constant 1 : i32
    %13 = arith.muli %arg0, %c1_i32 : i32
    %14 = arith.addi %13, %arg1 : i32
    %c1_i32_6 = arith.constant 1 : i32
    %15 = arith.addi %14, %c1_i32_6 : i32
    %c16_i32 = arith.constant 16 : i32
    %16 = arith.muli %15, %c16_i32 : i32
    %c16_i32_7 = arith.constant 16 : i32
    %17 = arith.cmpi sle, %16, %c16_i32_7 : i32
    %18 = arith.extui %17 : i1 to i32
    %c0_i32_8 = arith.constant 0 : i32
    %19 = arith.cmpi ne, %18, %c0_i32_8 : i32
    scf.if %19 {
      %c0_12 = arith.constant 0 : index
      %c0_13 = arith.constant 0 : index
      %26 = vector.load %arg6[%c0_12, %c0_13] : memref<8x128xf32, #tpu.memory_space<vmem>>, vector<8x128xf32>
      %27 = vector.shape_cast %8 : vector<16x128xf32> to vector<2x8x128xf32>
      %cst_14 = arith.constant dense<0.000000e+00> : vector<8x128xf32>
      %28 = vector.multi_reduction <add>, %27, %cst_14 [0] : vector<2x8x128xf32> to vector<8x128xf32>
      %29 = arith.addf %26, %28 : vector<8x128xf32>
      %c0_15 = arith.constant 0 : index
      %c0_16 = arith.constant 0 : index
      %30 = vector.load %arg6[%c0_15, %c0_16] : memref<8x128xf32, #tpu.memory_space<vmem>>, vector<8x128xf32>
      tpu.vector_store %arg6[%c0_15, %c0_16], %29 {strides = array<i32>} : memref<8x128xf32, #tpu.memory_space<vmem>>, vector<8x128xf32>,
      %c0_17 = arith.constant 0 : index
      %c0_18 = arith.constant 0 : index
      %31 = vector.load %arg7[%c0_17, %c0_18] : memref<8x128xf32, #tpu.memory_space<vmem>>, vector<8x128xf32>
      %32 = vector.shape_cast %12 : vector<16x128xf32> to vector<2x8x128xf32>
      %cst_19 = arith.constant dense<0.000000e+00> : vector<8x128xf32>
      %33 = vector.multi_reduction <add>, %32, %cst_19 [0] : vector<2x8x128xf32> to vector<8x128xf32>
      %34 = arith.addf %31, %33 : vector<8x128xf32>
      %c0_20 = arith.constant 0 : index
      %c0_21 = arith.constant 0 : index
      %35 = vector.load %arg7[%c0_20, %c0_21] : memref<8x128xf32, #tpu.memory_space<vmem>>, vector<8x128xf32>
      tpu.vector_store %arg7[%c0_20, %c0_21], %34 {strides = array<i32>} : memref<8x128xf32, #tpu.memory_space<vmem>>, vector<8x128xf32>,
    } else {
    }
    %true = arith.constant true
    %20 = arith.xori %17, %true : i1
    %21 = arith.extui %20 : i1 to i32
    %c0_i32_9 = arith.constant 0 : i32
    %22 = arith.cmpi ne, %21, %c0_i32_9 : i32
    scf.if %22 {
      %c16_i32_12 = arith.constant 16 : i32
      %26 = arith.muli %14, %c16_i32_12 : i32
      %27 = tpu.iota {dimensions = array<i32: 0>} : vector<16x128xi32>
      %28 = vector.broadcast %26 : i32 to vector<16x128xi32>
      %29 = arith.addi %28, %27 : vector<16x128xi32>
      %c16_i32_13 = arith.constant 16 : i32
      %30 = vector.broadcast %c16_i32_13 : i32 to vector<16x128xi32>
      %31 = arith.cmpi slt, %29, %30 : vector<16x128xi32>
      %cst_14 = arith.constant 0.000000e+00 : f32
      %32 = vector.broadcast %cst_14 : f32 to vector<16x128xf32>
      %33 = arith.select %31, %8, %32 : vector<16x128xi1>, vector<16x128xf32>
      %cst_15 = arith.constant 0.000000e+00 : f32
      %34 = vector.broadcast %cst_15 : f32 to vector<16x128xf32>
      %35 = arith.select %31, %12, %34 : vector<16x128xi1>, vector<16x128xf32>
      %c0_16 = arith.constant 0 : index
      %c0_17 = arith.constant 0 : index
      %36 = vector.load %arg6[%c0_16, %c0_17] : memref<8x128xf32, #tpu.memory_space<vmem>>, vector<8x128xf32>
      %37 = vector.shape_cast %33 : vector<16x128xf32> to vector<2x8x128xf32>
      %cst_18 = arith.constant dense<0.000000e+00> : vector<8x128xf32>
      %38 = vector.multi_reduction <add>, %37, %cst_18 [0] : vector<2x8x128xf32> to vector<8x128xf32>
      %39 = arith.addf %36, %38 : vector<8x128xf32>
      %c0_19 = arith.constant 0 : index
      %c0_20 = arith.constant 0 : index
      %40 = vector.load %arg6[%c0_19, %c0_20] : memref<8x128xf32, #tpu.memory_space<vmem>>, vector<8x128xf32>
      tpu.vector_store %arg6[%c0_19, %c0_20], %39 {strides = array<i32>} : memref<8x128xf32, #tpu.memory_space<vmem>>, vector<8x128xf32>,
      %c0_21 = arith.constant 0 : index
      %c0_22 = arith.constant 0 : index
      %41 = vector.load %arg7[%c0_21, %c0_22] : memref<8x128xf32, #tpu.memory_space<vmem>>, vector<8x128xf32>
      %42 = vector.shape_cast %35 : vector<16x128xf32> to vector<2x8x128xf32>
      %cst_23 = arith.constant dense<0.000000e+00> : vector<8x128xf32>
      %43 = vector.multi_reduction <add>, %42, %cst_23 [0] : vector<2x8x128xf32> to vector<8x128xf32>
      %44 = arith.addf %41, %43 : vector<8x128xf32>
      %c0_24 = arith.constant 0 : index
      %c0_25 = arith.constant 0 : index
      %45 = vector.load %arg7[%c0_24, %c0_25] : memref<8x128xf32, #tpu.memory_space<vmem>>, vector<8x128xf32>
      tpu.vector_store %arg7[%c0_24, %c0_25], %44 {strides = array<i32>} : memref<8x128xf32, #tpu.memory_space<vmem>>, vector<8x128xf32>,
    } else {
    }
    %c0_i32_10 = arith.constant 0 : i32
    %23 = arith.cmpi eq, %arg1, %c0_i32_10 : i32
    %24 = arith.extui %23 : i1 to i32
    %c0_i32_11 = arith.constant 0 : i32
    %25 = arith.cmpi ne, %24, %c0_i32_11 : i32
    scf.if %25 {
      %c0_12 = arith.constant 0 : index
      %c0_13 = arith.constant 0 : index
      %26 = vector.load %arg6[%c0_12, %c0_13] : memref<8x128xf32, #tpu.memory_space<vmem>>, vector<8x128xf32>
      %27 = vector.shape_cast %26 : vector<8x128xf32> to vector<1x8x128xf32>
      %cst_14 = arith.constant dense<0.000000e+00> : vector<1xf32>
      %28 = vector.multi_reduction <add>, %27, %cst_14 [1, 2] : vector<1x8x128xf32> to vector<1xf32>
      %29 = vector.shape_cast %28 : vector<1xf32> to vector<1x1x1xf32>
      %30 = vector.extract %29[0, 0, 0] : f32 from vector<1x1x1xf32>
      %c0_15 = arith.constant 0 : index
      %c0_16 = arith.constant 0 : index
      %31 = memref.load %arg5[%c0_15, %c0_16] : memref<1x2xf32, #tpu.memory_space<smem>>
      memref.store %30, %arg5[%c0_15, %c0_16] : memref<1x2xf32, #tpu.memory_space<smem>>
      %c0_17 = arith.constant 0 : index
      %c0_18 = arith.constant 0 : index
      %32 = vector.load %arg7[%c0_17, %c0_18] : memref<8x128xf32, #tpu.memory_space<vmem>>, vector<8x128xf32>
      %33 = vector.shape_cast %32 : vector<8x128xf32> to vector<1x8x128xf32>
      %cst_19 = arith.constant dense<0.000000e+00> : vector<1xf32>
      %34 = vector.multi_reduction <add>, %33, %cst_19 [1, 2] : vector<1x8x128xf32> to vector<1xf32>
      %35 = vector.shape_cast %34 : vector<1xf32> to vector<1x1x1xf32>
      %36 = vector.extract %35[0, 0, 0] : f32 from vector<1x1x1xf32>
      %c0_20 = arith.constant 0 : index
      %c1 = arith.constant 1 : index
      %37 = memref.load %arg5[%c0_20, %c1] : memref<1x2xf32, #tpu.memory_space<smem>>
      memref.store %36, %arg5[%c0_20, %c1] : memref<1x2xf32, #tpu.memory_space<smem>>
    } else {
    }
    return
  }
  func.func @transform_0(%arg0: i32, %arg1: i32) -> (i32, i32) {
    %c1_i32 = arith.constant 1 : i32
    %0 = arith.muli %arg0, %c1_i32 : i32
    %1 = arith.addi %0, %arg1 : i32
    %c0_i32 = arith.constant 0 : i32
    %2 = arith.minsi %1, %c0_i32 : i32
    %c0_i32_0 = arith.constant 0 : i32
    %c0_i32_1 = arith.constant 0 : i32
    return %2, %c0_i32_0 : i32, i32
  }
  func.func @transform_1(%arg0: i32, %arg1: i32) -> (i32, i32) {
    %c1_i32 = arith.constant 1 : i32
    %0 = arith.muli %arg0, %c1_i32 : i32
    %1 = arith.addi %0, %arg1 : i32
    %c0_i32 = arith.constant 0 : i32
    %2 = arith.minsi %1, %c0_i32 : i32
    %c0_i32_0 = arith.constant 0 : i32
    %c0_i32_1 = arith.constant 0 : i32
    return %2, %c0_i32_0 : i32, i32
  }
  func.func @transform_2(%arg0: i32, %arg1: i32) -> (i32, i32) {
    %c1_i32 = arith.constant 1 : i32
    %0 = arith.muli %arg0, %c1_i32 : i32
    %1 = arith.addi %0, %arg1 : i32
    %c0_i32 = arith.constant 0 : i32
    %2 = arith.minsi %1, %c0_i32 : i32
    %c0_i32_0 = arith.constant 0 : i32
    %c0_i32_1 = arith.constant 0 : i32
    return %2, %c0_i32_0 : i32, i32
  }
  func.func @transform_3(%arg0: i32, %arg1: i32) -> (i32, i32) {
    %c0_i32 = arith.constant 0 : i32
    %c0_i32_0 = arith.constant 0 : i32
    return %arg0, %c0_i32 : i32, i32
  }
}

</mosaic_0001>

<bundles_post_ra>
// kernel: masked_dist.1
= control target key start
LH: loop header
LB: loop body
LE: loop exit
PB: predicated region body
PF: predicated region fallthrough
CT: control target
= control target key end

     0   :  { %8 = vsyncpa [#allocation5], 0  ;;  %s384_s0 = inlined_call_operand.hbm [shape: f32[16,128], index: 0, kind: input, shape index: {}]   ;;  %s385_s1 = inlined_call_operand.hbm [shape: f32[16,128], index: 1, kind: input, shape index: {}]   ;;  %s386_s2 = inlined_call_operand.hbm [shape: f32[16,128], index: 2, kind: input, shape index: {}]   ;;  %s387_s3 = inlined_call_operand.hbm [shape: f32[1,2], index: 3, kind: output, shape index: {}]  }
   0x1   :  { %9 = vsyncpa [#allocation8], 0 }
   0x2   :  { %10 = vsyncpa [#allocation6], 0  ;;  %s293_s12 = smov [#allocation7]   ;;  %s294_s14 = smov [#allocation4]  }
   0x3   :  { %s40_s13 = sshll.u32 %s293_s12, 4  ;;  %s22_s15 = sshll.u32 %s294_s14, 4  ;;  %s41_s13 = int_to_ptr.vmem [resolvable:$true] %s40_s13  ;;  %s320_s15 = int_to_ptr.vmem [resolvable:$true] %s22_s15 }
   0x4   :  { %s211_s18 = scalar_lea.hbm %s385_s1, 256 }
   0x5   :  { %p212_p0 = scmp.ne.s32.totalorder %s385_s1, %s211_s18  ;;  %p215_p1 = scmp.lt.u32.totalorder %s211_s18, %s385_s1 }
   0x7   :  { %p217_p2 = pnand %p215_p1, %p212_p0 }
   0x9   :  { %220 = shalt.err (!%p217_p2)
}
   0xa   :  { %s221_s23 = scalar_lea.vmem %s41_s13, 256  ;;  %p226_p4 = scmp.lt.s32.totalorder %s41_s13, %s41_s13 }
   0xb   :  { %p222_p3 = scmp.ne.s32.totalorder %s41_s13, %s221_s23  ;;  %p227_p5 = scmp.lt.s32.totalorder %s221_s23, %s221_s23 }
   0xd   :  { %p228_p6 = por %p227_p5, %p226_p4 }
   0xf   :  { %p229_p7 = pnand %p228_p6, %p222_p3 }
  0x11   :  { %232 = shalt.err (!%p229_p7)
}
  0x12   :  { %s295_s24 = smov 128   ;;  %s296_s25 = smov 8  }
  0x13   :  { %46 = dma.hbm_to_vmem [thread:$0]  %s385_s1, 256, %s41_s13, [#allocation8], %s295_s24, %s295_s24, %s296_s25  }
  0x14   :  { %s233_s30 = scalar_lea.hbm %s384_s0, 256 }
  0x15   :  { %p234_p8 = scmp.ne.s32.totalorder %s384_s0, %s233_s30  ;;  %p237_p9 = scmp.lt.u32.totalorder %s233_s30, %s384_s0 }
  0x17   :  { %p239_p10 = pnand %p237_p9, %p234_p8 }
  0x19   :  { %242 = shalt.err (!%p239_p10)
}
  0x1a   :  { %s243_s8 = scalar_lea.vmem %s320_s15, 256  ;;  %p248_p12 = scmp.lt.s32.totalorder %s320_s15, %s320_s15 }
  0x1b   :  { %p244_p11 = scmp.ne.s32.totalorder %s320_s15, %s243_s8  ;;  %p249_p13 = scmp.lt.s32.totalorder %s243_s8, %s243_s8 }
  0x1d   :  { %p250_p0 = por %p249_p13, %p248_p12 }
  0x1f   :  { %p251_p1 = pnand %p250_p0, %p244_p11 }
  0x21   :  { %254 = shalt.err (!%p251_p1)
}
  0x22   :  { %28 = dma.hbm_to_vmem [thread:$0]  %s384_s0, 256, %s320_s15, [#allocation5], %s295_s24, %s295_s24, %s296_s25  }
  0x23   :  { %s297_s10 = smov [#allocation9]   ;;  %s255_s14 = scalar_lea.hbm %s386_s2, 256 }
  0x24   :  { %s58_s11 = sshll.u32 %s297_s10, 4  ;;  %p256_p2 = scmp.ne.s32.totalorder %s386_s2, %s255_s14  ;;  %s59_s11 = int_to_ptr.vmem [resolvable:$true] %s58_s11 }
  0x25   :  { %p259_p3 = scmp.lt.u32.totalorder %s255_s14, %s386_s2 }
  0x27   :  { %p261_p4 = pnand %p259_p3, %p256_p2 }
  0x29   :  { %264 = shalt.err (!%p261_p4)
}
  0x2a   :  { %s265_s20 = scalar_lea.vmem %s59_s11, 256  ;;  %p270_p6 = scmp.lt.s32.totalorder %s59_s11, %s59_s11 }
  0x2b   :  { %p266_p5 = scmp.ne.s32.totalorder %s59_s11, %s265_s20  ;;  %p271_p7 = scmp.lt.s32.totalorder %s265_s20, %s265_s20 }
  0x2d   :  { %p272_p8 = por %p271_p7, %p270_p6 }
  0x2f   :  { %p273_p9 = pnand %p272_p8, %p266_p5 }
  0x31   :  { %276 = shalt.err (!%p273_p9)
}
  0x32   :  { %64 = dma.hbm_to_vmem [thread:$0]  %s386_s2, 256, %s59_s11, [#allocation8], %s295_s24, %s295_s24, %s296_s25  }
  0x33   :  { %287 = dma.done.wait [#allocation5], 256  }
  0x34   :  { %288 = vsyncadd [#allocation5], 4294967040 }
  0x35   :  { %289 = dma.done.wait [#allocation8], 512  }
  0x36   :  { %290 = vsyncadd [#allocation8], 4294966784  ;;  %v92_v0 = vld [vmem:[#allocation4] sm:$0xff]  ;;  %v93_v1 = vld [vmem:[#allocation4 + $0x8] sm:$0xff]  ;;  %v298_v12 = vmov 0.0   ;;  %s277_s24 = scalar_lea.hbm %s387_s3, 16 }
  0x37   :  { %v94_v2 = vld [vmem:[#allocation7] sm:$0xff]  ;;  %v95_v3 = vld [vmem:[#allocation7 + $0x8] sm:$0xff]  ;;  %v96_v4 = vld [vmem:[#allocation9] sm:$0xff]  ;;  %p278_p10 = scmp.ne.s32.totalorder %s387_s3, %s277_s24  ;;  %p281_p11 = scmp.lt.u32.totalorder %s277_s24, %s387_s3 }
  0x38   :  { %v97_v5 = vld [vmem:[#allocation9 + $0x8] sm:$0xff]  ;;  %v98_v6 = vsub.f32 %v92_v0, %v94_v2  ;;  %v99_v7 = vsub.f32 %v93_v1, %v95_v3  ;;  %vm104_vm0 = vcmp.gt.f32.partialorder %v96_v4, 0.0 }
  0x39   :  { %vm105_vm1 = vcmp.gt.f32.partialorder %v97_v5, 0.0  ;;  %v198_v13 = vsel %vm104_vm0, 1.0, %v298_v12  ;;  %p283_p12 = pnand %p281_p11, %p278_p10 }
  0x3a   :  { %v100_v8 = vmul.f32 %v98_v6, %v96_v4  ;;  %v101_v9 = vmul.f32 %v99_v7, %v97_v5  ;;  %v199_v14 = vsel %vm105_vm1, 1.0, %v298_v12 }
  0x3b   :  { %v122_v16 = vadd.f32 %v199_v14, %v198_v13 }
  0x3c   :  { %v102_v10 = vmul.f32 %v100_v8, %v100_v8  ;;  %v103_v11 = vmul.f32 %v101_v9, %v101_v9 }
  0x3e   :  { %v118_v15 = vadd.f32 %v103_v11, %v102_v10 }
  0x40   :  { %154 = vadd.xlane.f32.xlu0 %v118_v15 }
  0x44   :  { %166 = vadd.xlane.f32.xlu0 %v122_v16 }
  0xcd   :  { %v155_v17 = vpop.xlane.xlu0 %154 }
  0xce   :  { %v156_v18 = vrot.slane %v155_v17, 4 }
  0xd0   :  { %v157_v19 = vadd.f32 %v156_v18, %v155_v17 }
  0xd1   :  { %v167_v20 = vpop.xlane.xlu0 %166 }
  0xd2   :  { %v158_v21 = vrot.slane %v157_v19, 2  ;;  %v168_v22 = vrot.slane %v167_v20, 4 }
  0xd4   :  { %v169_v23 = vadd.f32 %v168_v22, %v167_v20  ;;  %v159_v24 = vadd.f32 %v158_v21, %v157_v19 }
  0xd6   :  { %v170_v25 = vrot.slane %v169_v23, 2  ;;  %v160_v26 = vrot.slane %v159_v24, 1 }
  0xd8   :  { %v171_v27 = vadd.f32 %v170_v25, %v169_v23  ;;  %v161_v28 = vadd.f32 %v160_v26, %v159_v24 }
  0xda   :  { %200 = vpush %v161_v28  ;;  %v172_v29 = vrot.slane %v171_v27, 1 }
  0xdc   :  { %v173_v30 = vadd.f32 %v172_v29, %v171_v27 }
  0xde   :  { %202 = vpush %v173_v30 }
 0x10b   :  { %s201_s2 = spop %200 }
 0x10c   :  { %164 = sst [smem:[#allocation10]] %s201_s2 }
 0x10f   :  { %s203_s21 = spop %202 }
 0x110   :  { %176 = sst [smem:[#allocation10 + $0x1]] %s203_s21 }
 0x111   :  { %286 = shalt.err (!%p283_p12)
}
 0x112   :  { %s299_s29 = smov [#allocation10]  }
 0x113   :  { %184 = dma.smem_to_hbm %s299_s29, 16, %s387_s3, [#allocation6]  }
 0x114   :  { %291 = dma.done.wait [#allocation6], 16  }
 0x115   :  { %292 = vsyncadd [#allocation6], 4294967280 }
 0x116   :  { %188 = sfence }
 0x117   :  { %189 = vsyncpa [#allocation5], 1 }
 0x118   :  { %190 = vsyncpa [#allocation8], 1 }
 0x119   :  { %191 = vsyncpa [#allocation6], 1 }

</bundles_post_ra>
